<compile_context>
chip_gen: v6e
topology: v6e:2x2x1
jax: 0.10.0
libtpu: 0.0.40
codegen_flags: <defaults>
</compile_context>

<pallas_src>
import functools

import jax
import jax.numpy as jnp
from jax.experimental import pallas as pl
from jax.experimental.pallas import tpu as pltpu


def _sobel_kernel(x_ref, out_ref, xpad_ref, *, H, W, PAD):
    # x_ref:    (B, 1, L)  flattened single-channel images (row-major H*W), unpadded
    # out_ref:  (B, 2, L)  channel 0 = Sobel-x, channel 1 = Sobel-y
    # xpad_ref: (B, L + 2*PAD) VMEM scratch; PAD (>= W+1) zero lanes on each side act
    #           as the zero padding for reads that fall off the top/bottom row.
    L = H * W
    B = x_ref.shape[0]

    xpad_ref[...] = jnp.zeros_like(xpad_ref)       # cheap VMEM clear -> zero halo
    xpad_ref[:, PAD:PAD + L] = x_ref[:, 0, :]      # lane-aligned interior store
    xp = xpad_ref[...]

    def nbr(d):
        # Value of x at flat offset d from each pixel; off-image rows land in the halo.
        return xp[:, PAD + d:PAD + d + L]

    ul, up, ur = nbr(-W - 1), nbr(-W), nbr(-W + 1)   # row h-1: w-1, w, w+1
    lf, rt = nbr(-1), nbr(1)                         # row h  : w-1,    w+1
    dl, dn, dr = nbr(W - 1), nbr(W), nbr(W + 1)      # row h+1: w-1, w, w+1

    # +-1 flat shifts wrap across rows: mask terms at the image's left/right edge.
    lane = jax.lax.broadcasted_iota(jnp.int32, (B, L), 1)
    col = (lane & (W - 1)) if (W & (W - 1)) == 0 else (lane % W)
    has_l = col > 0
    has_r = col < (W - 1)

    # fx = [[1,0,-1],[2,0,-2],[1,0,-1]]   (cross-correlation, as torch conv2d)
    col_l = ul + 2.0 * lf + dl                       # vertical [1,2,1] at column w-1
    col_r = ur + 2.0 * rt + dr                       # vertical [1,2,1] at column w+1
    gx = jnp.where(has_l, col_l, 0.0) - jnp.where(has_r, col_r, 0.0)

    # fy = [[1,2,1],[0,0,0],[-1,-2,-1]]
    gy = (jnp.where(has_l, ul - dl, 0.0)
          + 2.0 * (up - dn)
          + jnp.where(has_r, ur - dr, 0.0))

    out_ref[:, 0, :] = gx
    out_ref[:, 1, :] = gy


def gradient_forward(x, *, vmem_budget_bytes=8 * 1024 * 1024):
    """x: (N, 1, H, W) float32 -> (N, 2, H, W) float32 (Sobel-x, Sobel-y)."""
    N, C, H, W = x.shape
    assert C == 1, "Gradient module expects single-channel input"
    L = H * W
    PAD = pl.cdiv(W + 1, 128) * 128     # lane-aligned halo, >= W+1

    # Per-step VMEM estimate: input block (x2 buffers) + output block (sublane-padded
    # 2->8, x2 buffers) + scratch.  Cap so the tiling fits all generations' defaults.
    bytes_per_image = 4 * (2 * L + 2 * 8 * L + (L + 2 * PAD))
    b_budget = max(1, vmem_budget_bytes // bytes_per_image)
    block_n = max(1, min(8, N, b_budget))
    if N >= 2:                           # keep >= 2 grid steps so both v7x TCs get work
        block_n = max(1, min(block_n, (N + 1) // 2))
    grid_n = pl.cdiv(N, block_n)
    # TODO(synk): for images where a single (1, L) block exceeds the VMEM budget, add a
    # row-tile grid axis with a 1-row halo instead of whole-image blocks.

    xf = x.reshape(N, 1, L)              # contiguous reshape: no extra HBM pass

    kernel = functools.partial(_sobel_kernel, H=H, W=W, PAD=PAD)
    out_flat = pl.pallas_call(
        kernel,
        out_shape=jax.ShapeDtypeStruct((N, 2, L), x.dtype),
        grid_spec=pltpu.PrefetchScalarGridSpec(
            num_scalar_prefetch=0,
            grid=(grid_n,),
            in_specs=[pl.BlockSpec((block_n, 1, L), lambda n: (n, 0, 0))],
            out_specs=pl.BlockSpec((block_n, 2, L), lambda n: (n, 0, 0)),
            scratch_shapes=[pltpu.VMEM((block_n, L + 2 * PAD), x.dtype)],
        ),
        compiler_params=pltpu.CompilerParams(
            dimension_semantics=("parallel",)),
    )(xf)
    return out_flat.reshape(N, 2, H, W)


def _reference(x):
    # Pure-JAX reference (same math as the torch module, for the sanity check).
    fx = jnp.array([[1, 0, -1], [2, 0, -2], [1, 0, -1]], jnp.float32)
    fy = jnp.array([[1, 2, 1], [0, 0, 0], [-1, -2, -1]], jnp.float32)
    w = jnp.stack([fx, fy])[:, None, :, :]  # (2,1,3,3)
    return jax.lax.conv_general_dilated(
        x, w, window_strides=(1, 1), padding=((1, 1), (1, 1)),
        dimension_numbers=("NCHW", "OIHW", "NCHW"))


if __name__ == "__main__":
    key = jax.random.PRNGKey(0)
    N, C, H, W = 2, 1, 16, 16
    x = jax.random.normal(key, (N, C, H, W), dtype=jnp.float32)

    out = gradient_forward(x)
    out = jax.block_until_ready(out)

    ref = _reference(x)
    assert out.shape == (N, 2, H, W), out.shape
    assert jnp.allclose(out, ref, atol=1e-5, rtol=1e-5), "mismatch vs reference"
    print("KERNEL_OK")
</pallas_src>

<mosaic_0001>
module attributes {stable_mosaic.version = 11 : i64} {
  func.func @_sobel_kernel(%arg0: i32, %arg1: memref<1x1x256xf32, #tpu.memory_space<vmem>>, %arg2: memref<1x2x256xf32, #tpu.memory_space<vmem>>, %arg3: memref<1x512xf32, #tpu.memory_space<vmem>>) attributes {dimension_semantics = [#tpu.dimension_semantics<parallel>], iteration_bounds = array<i64: 2>, scalar_prefetch = 0 : i64, scratch_operands = 1 : i64, tpu.core_type = #tpu.core_type<tc>, window_params = [{transform_indices = @transform_0, window_bounds = array<i64: 1, 1, 256>}, {transform_indices = @transform_1, window_bounds = array<i64: 1, 2, 256>}]} {
    %cst = arith.constant 0.000000e+00 : f32
    %0 = vector.broadcast %cst : f32 to vector<1x512xf32>
    %c0 = arith.constant 0 : index
    %c0_0 = arith.constant 0 : index
    %1 = vector.load %arg3[%c0, %c0_0] : memref<1x512xf32, #tpu.memory_space<vmem>>, vector<1x512xf32>
    tpu.vector_store %arg3[%c0, %c0_0], %0 {strides = array<i32>} : memref<1x512xf32, #tpu.memory_space<vmem>>, vector<1x512xf32>,
    %c0_1 = arith.constant 0 : index
    %c0_2 = arith.constant 0 : index
    %c0_3 = arith.constant 0 : index
    %2 = vector.load %arg1[%c0_1, %c0_2, %c0_3] : memref<1x1x256xf32, #tpu.memory_space<vmem>>, vector<1x1x256xf32>
    %3 = vector.shape_cast %2 : vector<1x1x256xf32> to vector<1x256xf32>
    %c0_4 = arith.constant 0 : index
    %c128 = arith.constant 128 : index
    %4 = vector.load %arg3[%c0_4, %c128] : memref<1x512xf32, #tpu.memory_space<vmem>>, vector<1x256xf32>
    tpu.vector_store %arg3[%c0_4, %c128], %3 {strides = array<i32>} : memref<1x512xf32, #tpu.memory_space<vmem>>, vector<1x256xf32>,
    %c0_5 = arith.constant 0 : index
    %c0_6 = arith.constant 0 : index
    %5 = vector.load %arg3[%c0_5, %c0_6] : memref<1x512xf32, #tpu.memory_space<vmem>>, vector<1x512xf32>
    %6 = vector.extract_strided_slice %5 {offsets = [0, 111], sizes = [1, 256], strides = [1, 1]} : vector<1x512xf32> to vector<1x256xf32>
    %7 = vector.extract_strided_slice %5 {offsets = [0, 112], sizes = [1, 256], strides = [1, 1]} : vector<1x512xf32> to vector<1x256xf32>
    %8 = vector.extract_strided_slice %5 {offsets = [0, 113], sizes = [1, 256], strides = [1, 1]} : vector<1x512xf32> to vector<1x256xf32>
    %9 = vector.extract_strided_slice %5 {offsets = [0, 127], sizes = [1, 256], strides = [1, 1]} : vector<1x512xf32> to vector<1x256xf32>
    %10 = vector.extract_strided_slice %5 {offsets = [0, 129], sizes = [1, 256], strides = [1, 1]} : vector<1x512xf32> to vector<1x256xf32>
    %11 = vector.extract_strided_slice %5 {offsets = [0, 143], sizes = [1, 256], strides = [1, 1]} : vector<1x512xf32> to vector<1x256xf32>
    %12 = vector.extract_strided_slice %5 {offsets = [0, 144], sizes = [1, 256], strides = [1, 1]} : vector<1x512xf32> to vector<1x256xf32>
    %13 = vector.extract_strided_slice %5 {offsets = [0, 145], sizes = [1, 256], strides = [1, 1]} : vector<1x512xf32> to vector<1x256xf32>
    %14 = tpu.iota {dimensions = array<i32: 1>} : vector<1x256xi32>
    %c15_i32 = arith.constant 15 : i32
    %15 = vector.broadcast %c15_i32 : i32 to vector<1x256xi32>
    %16 = arith.andi %14, %15 : vector<1x256xi32>
    %c0_i32 = arith.constant 0 : i32
    %17 = vector.broadcast %c0_i32 : i32 to vector<1x256xi32>
    %18 = arith.cmpi sgt, %16, %17 : vector<1x256xi32>
    %c15_i32_7 = arith.constant 15 : i32
    %19 = vector.broadcast %c15_i32_7 : i32 to vector<1x256xi32>
    %20 = arith.cmpi slt, %16, %19 : vector<1x256xi32>
    %cst_8 = arith.constant 2.000000e+00 : f32
    %21 = vector.broadcast %cst_8 : f32 to vector<1x256xf32>
    %22 = arith.mulf %21, %9 : vector<1x256xf32>
    %23 = arith.addf %6, %22 : vector<1x256xf32>
    %24 = arith.addf %23, %11 : vector<1x256xf32>
    %cst_9 = arith.constant 2.000000e+00 : f32
    %25 = vector.broadcast %cst_9 : f32 to vector<1x256xf32>
    %26 = arith.mulf %25, %10 : vector<1x256xf32>
    %27 = arith.addf %8, %26 : vector<1x256xf32>
    %28 = arith.addf %27, %13 : vector<1x256xf32>
    %cst_10 = arith.constant 0.000000e+00 : f32
    %29 = vector.broadcast %cst_10 : f32 to vector<1x256xf32>
    %30 = arith.select %18, %24, %29 : vector<1x256xi1>, vector<1x256xf32>
    %cst_11 = arith.constant 0.000000e+00 : f32
    %31 = vector.broadcast %cst_11 : f32 to vector<1x256xf32>
    %32 = arith.select %20, %28, %31 : vector<1x256xi1>, vector<1x256xf32>
    %33 = arith.subf %30, %32 : vector<1x256xf32>
    %34 = arith.subf %6, %11 : vector<1x256xf32>
    %cst_12 = arith.constant 0.000000e+00 : f32
    %35 = vector.broadcast %cst_12 : f32 to vector<1x256xf32>
    %36 = arith.select %18, %34, %35 : vector<1x256xi1>, vector<1x256xf32>
    %37 = arith.subf %7, %12 : vector<1x256xf32>
    %cst_13 = arith.constant 2.000000e+00 : f32
    %38 = vector.broadcast %cst_13 : f32 to vector<1x256xf32>
    %39 = arith.mulf %38, %37 : vector<1x256xf32>
    %40 = arith.addf %36, %39 : vector<1x256xf32>
    %41 = arith.subf %8, %13 : vector<1x256xf32>
    %cst_14 = arith.constant 0.000000e+00 : f32
    %42 = vector.broadcast %cst_14 : f32 to vector<1x256xf32>
    %43 = arith.select %20, %41, %42 : vector<1x256xi1>, vector<1x256xf32>
    %44 = arith.addf %40, %43 : vector<1x256xf32>
    %c0_15 = arith.constant 0 : index
    %c0_16 = arith.constant 0 : index
    %c0_17 = arith.constant 0 : index
    %45 = vector.load %arg2[%c0_15, %c0_16, %c0_17] : memref<1x2x256xf32, #tpu.memory_space<vmem>>, vector<1x1x256xf32>
    %46 = vector.shape_cast %45 : vector<1x1x256xf32> to vector<1x256xf32>
    %47 = vector.shape_cast %33 : vector<1x256xf32> to vector<1x1x256xf32>
    tpu.vector_store %arg2[%c0_15, %c0_16, %c0_17], %47 {strides = array<i32>} : memref<1x2x256xf32, #tpu.memory_space<vmem>>, vector<1x1x256xf32>,
    %c0_18 = arith.constant 0 : index
    %c1 = arith.constant 1 : index
    %c0_19 = arith.constant 0 : index
    %48 = vector.load %arg2[%c0_18, %c1, %c0_19] : memref<1x2x256xf32, #tpu.memory_space<vmem>>, vector<1x1x256xf32>
    %49 = vector.shape_cast %48 : vector<1x1x256xf32> to vector<1x256xf32>
    %50 = vector.shape_cast %44 : vector<1x256xf32> to vector<1x1x256xf32>
    tpu.vector_store %arg2[%c0_18, %c1, %c0_19], %50 {strides = array<i32>} : memref<1x2x256xf32, #tpu.memory_space<vmem>>, vector<1x1x256xf32>,
    return
  }
  func.func @transform_0(%arg0: i32) -> (i32, i32, i32) {
    %c0_i32 = arith.constant 0 : i32
    %c0_i32_0 = arith.constant 0 : i32
    %c0_i32_1 = arith.constant 0 : i32
    return %arg0, %c0_i32, %c0_i32_0 : i32, i32, i32
  }
  func.func @transform_1(%arg0: i32) -> (i32, i32, i32) {
    %c0_i32 = arith.constant 0 : i32
    %c0_i32_0 = arith.constant 0 : i32
    %c0_i32_1 = arith.constant 0 : i32
    return %arg0, %c0_i32, %c0_i32_0 : i32, i32, i32
  }
}

</mosaic_0001>

<bundles_post_ra>
// kernel: tpu_custom_call.1
= control target key start
LH: loop header
LB: loop body
LE: loop exit
PB: predicated region body
PF: predicated region fallthrough
CT: control target
= control target key end

     0   :  { %6 = vsyncpa [#allocation4], 0  ;;  %s818_s0 = inlined_call_operand.hbm [shape: f32[2,1,256], index: 0, kind: input, shape index: {}]   ;;  %s819_s1 = inlined_call_operand.hbm [shape: f32[2,2,256], index: 1, kind: output, shape index: {}]  }
   0x1   :  { %8 = vsyncpa [#allocation4 + $0x1], 0 }
   0x2   :  { %9 = vsyncpa [#allocation5], 0 }
   0x3   :  { %11 = vsyncpa [#allocation5 + $0x1], 0  ;;  %s618_s6 = smov 0   ;;  %s620_s7 = smov 0  }
   0x4   :  { %s622_s8 = smov 0   ;;  %s624_s9 = smov 0  }
   0x5 LB: > { %s639_s10 = sadd.s32 4294967295, %s595_s9   ;;  %s431_s11 = sadd.s32 4294967294, %s595_s9   ;;  %s595_s9 = sphi %s624_s9, %s846_s9   ;;  %s591_s8 = sphi %s622_s8, %s845_s8   ;;  %s587_s7 = sphi %s620_s7, %s844_s7   ;;  %s583_s6 = sphi %s618_s6, %s843_s6  }
   0x6   : > { %s643_s12 = sadd.s32 1, %s595_s9   ;;  %s24_s13 = sadd.s32 1, %s591_s8 }
   0x7   : > { %s21_s14 = ssub.s32 %s595_s9, %s643_s12  ;;  %p31_p0 = scmp.ne.s32.totalorder %s591_s8, %s587_s7 }
   0x8   : > { %p22_p1 = scmp.eq.s32.totalorder %s21_s14, 0  ;;  %p32_p2 = scmp.eq.s32.totalorder %s595_s9, 0 }
   0x9   : > { %p37_p3 = scmp.ne.s32.totalorder %s587_s7, %s583_s6  ;;  %p38_p4 = scmp.eq.s32.totalorder %s639_s10, 0 }
   0xa   : > { %s655_s15 = scalar_select %p22_p1, %s591_s8, %s24_s13  }
   0xb   : > { %p657_p5 = por %p32_p2, %p31_p0  ;;  %p661_p6 = por %p38_p4, %p37_p3 }
   0xc   : > { %p61_p7 = scmp.eq.s32.totalorder %s639_s10, 1  ;;  %p67_p8 = scmp.eq.s32.totalorder %s431_s11, 1 }
   0xd   : > { %s823_s17 = scalar_select %p661_p6, 1, 0 }
   0xe   : > { %p460_p10 = scmp.lt.s32.totalorder %s595_s9, 2  ;;  %p668_p11 = por %p61_p7, %p31_p0 }
   0xf   : > { %p672_p12 = por %p67_p8, %p37_p3  ;;  %s87_s20 = sand.u32 1, %s591_s8  }
  0x10   : > { %s824_s18 = scalar_select %p668_p11, 1, 0 }
  0x11   : > { %s825_s19 = scalar_select %p672_p12, 1, 0 }
  0x12   : > { %s446_s21 = sshll.u32 %s595_s9, 5  ;;  %s434_s22 = sshll.u32 %s87_s20, 1 }
  0x13   : > { %s681_s25 = scalar_lea.hbm %s818_s0, %s446_s21  ;;  %s91_s26 = scalar_lea.vmem [#allocation3], %s434_s22 }
  0x14   : > { %s99_s27 = sshll.u32 %s91_s26, 4  ;;  %p685_p13 = pnand %p460_p10, %p657_p5  ;;  %s689_s27 = int_to_ptr.vmem [resolvable:$true] %s99_s27 }
  0x15   : > { %s88_s29 = scalar_lea.sflag [#allocation4], %s87_s20  ;;  %s503_s30 = scalar_lea.hbm %s681_s25, 32 }
  0x16   : > { %p504_p2 = scmp.ne.s32.totalorder %s681_s25, %s503_s30  ;;  %p505_p3 = pneg %p685_p13 }
  0x17   : > { %s508_s4 = scalar_lea.hbm %s818_s0, 64  ;;  %p509_p5 = scmp.lt.s32.totalorder %s681_s25, %s818_s0 }
  0x18   : > { %p506_p4 = pnand %p505_p3, %p504_p2  ;;  %p510_p8 = scmp.lt.s32.totalorder %s508_s4, %s503_s30 }
  0x1a   : > { %p507_p7 = pneg %p506_p4  ;;  %p511_p10 = por %p510_p8, %p509_p5 }
  0x1c   : > { %p512_p9 = pnand %p511_p10, %p507_p7 }
  0x1e   : > { %515 = shalt.err (!%p512_p9)
}
  0x1f   : > { %s516_s13 = scalar_lea.vmem %s689_s27, 32  ;;  %s597_s14 = smov [#allocation3]  }
  0x20   : > { %p517_p0 = scmp.ne.s32.totalorder %s689_s27, %s516_s13  ;;  %s521_s16 = sshll.u32 %s597_s14, 4  ;;  %s522_s16 = int_to_ptr.vmem [resolvable:$false] %s521_s16 }
  0x21   : > { %s523_s20 = scalar_lea.vmem %s522_s16, 64  ;;  %p524_p4 = scmp.lt.s32.totalorder %s689_s27, %s522_s16 }
  0x22   : > { %p519_p1 = pnand %p517_p0, %p505_p3  ;;  %p525_p12 = scmp.lt.s32.totalorder %s523_s20, %s516_s13 }
  0x24   : > { %p520_p2 = pneg %p519_p1  ;;  %p526_p11 = por %p525_p12, %p524_p4 }
  0x26   : > { %p527_p6 = pnand %p526_p11, %p520_p2 }
  0x28   : > { %530 = shalt.err (!%p527_p6)
}
  0x29   : > { %455 = dma.hbm_to_vmem [thread:$0]  (!%p685_p13), %s681_s25, 32, %s689_s27, %s88_s29  }
  0x2a   : > { %p827_p9 = scmp.lt.s32.totalorder %s595_s9, 3  ;;  %p828_p7 = scmp.ge.s32.totalorder %s595_s9, 1 }
  0x2c   : > { %p105_p0 = pnand %p828_p7, %p827_p9 }
  0x2d   : > { %s716_s21 = sand.u32 (!%p105_p0), 1, %s587_s7   ;;  %p829_p6 = scmp.ne.s32.totalorder (!%p105_p0), %s823_s17, 0 }
  0x2e   : > { %108 = sbr.rel (%p105_p0) target bundleno = 454 (0x1c6), region = 24  ;;  %s438_s22 = sshll.u32 (!%p105_p0), %s716_s21, 1 }
  0x2f   : > { %s111_s23 = scalar_lea.sflag (!%p105_p0), [#allocation4], %s716_s21  ;;  %s114_s24 = scalar_lea.vmem (!%p105_p0), [#allocation3], %s438_s22 }
  0x33   : > { %574 = dma.done.wait (%p829_p6), %s111_s23, 32  }
  0x34   : > { %576 = vsyncadd (%p829_p6), %s111_s23, 4294967264  ;;  %v133_v0 = vlaneseq  ;;  %v598_v1 = vmov 0.0   ;;  %v138_v3 = vld [vmem:[%s114_s24] sm:$0x3]  ;;  %s599_s25 = smov 127   ;;  %s600_s17 = smov 112  }
  0x35   : > { %s601_s26 = smov 96   ;;  %vm173_vm2 = vcmask 1039360   ;;  %vm165_vm3 = vcmask 785408   ;;  %s602_s27 = smov 113   ;;  %vm157_vm4 = vcmask 916480   ;;  %vm181_vm5 = vcmask 924672  }
  0x36   : > { %vm135_vm0 = vcmp.lt.s32.totalorder %v133_v0, 512  ;;  %vm726_vm1 = vcmp.lt.s32.totalorder %v133_v0, 256  ;;  %v733_v9 = vshrl.u32 %v133_v0, 7  ;;  %s603_s28 = smov 17   ;;  %s604_s29 = smov 16   ;;  %v144_v48 = vand.u32 127, %v133_v0 }
  0x37   : > { %137 = vst.msk [vmem:[#allocation2] sm:$0xf] %vm135_vm0, %v598_v1  ;;  %s605_s30 = smov 15   ;;  %vm231_vm6 = vcmask 121856   ;;  %vm205_vm7 = vcmask 138240   ;;  %vm286_vm8 = vcmask 130048  }
  0x38   : > { %141 = vst.msk [vmem:[#allocation2 + $0x1] sm:$0x3] %vm726_vm1, %v138_v3  ;;  %v189_v15 = vsub.s32 0, %v733_v9  ;;  %v193_v16 = vsub.s32 1, %v733_v9  ;;  %v197_v20 = vsub.s32 2, %v733_v9  ;;  %v145_v51 = vadd.s32 128, %v144_v48 }
  0x39   : > { %v146_v54 = vand.u32 15, %v144_v48  ;;  %v606_v56 = vmov 1966171168   ;;  %s439_s2 = sshll.u32 %s716_s21, 2  ;;  %s447_s3 = sshll.u32 %s639_s10, 6 }
  0x3a   : > { %v147_v55 = vand.u32 15, %v145_v51  ;;  %v311_v57 = vunpack.c.l.s4 %v606_v56  ;;  %s132_s4 = scalar_lea.vmem [#allocation6], %s439_s2  ;;  %s359_s14 = scalar_lea.hbm %s819_s1, %s447_s3 }
  0x3b   : > { %vm739_vm9 = vcmp.lt.s32.totalorder %v146_v54, 15  ;;  %vm744_vm10 = vcmp.gt.s32.totalorder %v146_v54, 0  ;;  %s361_s5 = sshll.u32 %s132_s4, 4  ;;  %s347_s16 = scalar_lea.sflag [#allocation5], %s716_s21  ;;  %s362_s5 = int_to_ptr.vmem [resolvable:$true] %s361_s5 }
  0x3c   : > { %vm748_vm11 = vcmp.gt.s32.totalorder %v147_v55, 0  ;;  %vm752_vm12 = vcmp.lt.s32.totalorder %v147_v55, 15  ;;  %s531_s20 = scalar_lea.vmem %s362_s5, 64  ;;  %p840_p12 = scmp.ne.s32.totalorder %s824_s18, 0 }
  0x3d   : > { %p532_p11 = scmp.ne.s32.totalorder %s362_s5, %s531_s20  ;;  %s607_s10 = smov [#allocation6]  }
  0x3e   : > { %s535_s22 = sshll.u32 %s607_s10, 4  ;;  %s536_s22 = int_to_ptr.vmem [resolvable:$false] %s535_s22 }
  0x3f   : > { %v142_v4 = vld [vmem:[#allocation2] sm:$0xf]  ;;  %p533_p13 = pnand %p532_p11, %p840_p12  ;;  %s537_s23 = scalar_lea.vmem %s536_s22, 128 }
  0x40   : > { %169 = vrot.lane.b32.xlu0 %v142_v4, %s599_s25  ;;  %v152_v5 = vmul.f32 2.0, %v142_v4  ;;  %p538_p3 = scmp.lt.s32.totalorder %s362_s5, %s536_s22  ;;  %p539_p5 = scmp.lt.s32.totalorder %s537_s23, %s531_s20 }
  0x41   : > { %p534_p1 = pneg %p533_p13 }
  0x42   : > { %154 = vrot.lane.b32.xlu1 %v152_v5, %s600_s17  ;;  %p540_p8 = por %p539_p5, %p538_p3 }
  0x44   : > { %162 = vrot.lane.b32.xlu0 %v142_v4, %s601_s26  ;;  %p541_p10 = pnand %p540_p8, %p534_p1 }
  0xb2   : > { %v170_v6 = vpop.permute.xlu0 %169 }
  0xb3   : > { %v171_v7 = vrot.slane %v170_v6, 1  ;;  %v172_v8 = vrot.slane %v170_v6, 2  ;;  %v312_v6 = vunpack.c.0.s8 %v311_v57 }
  0xb4   : > { %v155_v13 = vpop.permute.xlu1 %154 }
  0xb5   : > { %v174_v10 = vsel %vm173_vm2, %v171_v7, %v172_v8  ;;  %v156_v18 = vrot.slane %v155_v13, 1 }
  0xb6   : > { %v176_v11 = vmul.f32 2.0, %v174_v10  ;;  %v163_v12 = vpop.permute.xlu0 %162 }
  0xb7   : > { %v164_v14 = vrot.slane %v163_v12, 1  ;;  %v158_v24 = vsel %vm157_vm4, %v155_v13, %v156_v18 }
  0xb8   : > { %178 = vrot.lane.b32.xlu1 %v176_v11, %s602_s27  ;;  %v160_v27 = vadd.f32 %v158_v24, %v142_v4 }
  0xb9   : > { %v166_v17 = vsel %vm165_vm3, %v163_v12, %v164_v14 }
  0xba   : > { %v240_v19 = vsub.f32 %v142_v4, %v166_v17  ;;  %v168_v29 = vadd.f32 %v166_v17, %v160_v27 }
  0xbc   : > { %v245_v21 = vrot.slane %v240_v19, %v189_v15  ;;  %v249_v22 = vrot.slane %v240_v19, %v193_v16  ;;  %v266_v23 = vmul.f32 2.0, %v240_v19  ;;  %v253_v25 = vrot.slane %v240_v19, %v197_v20 }
  0xbd   : > { %v194_v31 = vrot.slane %v168_v29, %v193_v16  ;;  %v190_v32 = vrot.slane %v168_v29, %v189_v15  ;;  %v198_v33 = vrot.slane %v168_v29, %v197_v20  ;;  %v315_v19 = vsub.s32 %v312_v6, %v733_v9 }
  0xbe   : > { %254 = vrot.lane.b32.xlu0 %v245_v21, %s603_s28  ;;  %256 = vrot.lane.b32.xlu1 %v249_v22, %s603_s28  ;;  %v271_v26 = vrot.slane %v266_v23, %v189_v15  ;;  %v279_v28 = vrot.slane %v266_v23, %v197_v20  ;;  %v275_v30 = vrot.slane %v266_v23, %v193_v16 }
  0xc2   : > { %258 = vrot.lane.b32.xlu0 %v253_v25, %s603_s28  ;;  %280 = vrot.lane.b32.xlu1 %v271_v26, %s604_s29 }
  0xc6   : > { %293 = vrot.lane.b32.xlu0 %v245_v21, %s605_s30  ;;  %284 = vrot.lane.b32.xlu1 %v279_v28, %s604_s29 }
  0xca   : > { %282 = vrot.lane.b32.xlu0 %v275_v30, %s604_s29  ;;  %201 = vrot.lane.b32.xlu1 %v194_v31, %s603_s28 }
  0xce   : > { %199 = vrot.lane.b32.xlu0 %v190_v32, %s603_s28 }
  0xd2   : > { %203 = vrot.lane.b32.xlu0 %v198_v33, %s603_s28 }
 0x12a   : > { %v179_v34 = vpop.permute.xlu1 %178 }
 0x12b   : > { %v180_v35 = vrot.slane %v179_v34, 7 }
 0x12d   : > { %v182_v36 = vsel %vm181_vm5, %v180_v35, %v179_v34 }
 0x12e   : > { %v184_v37 = vadd.f32 %v182_v36, %v142_v4 }
 0x130   : > { %v185_v38 = vadd.f32 %v184_v37, %v166_v17  ;;  %v255_v42 = vpop.permute.xlu0 %254  ;;  %v257_v45 = vpop.permute.xlu1 %256 }
 0x131   : > { %v260_v0 = vsel %vm205_vm7, %v255_v42, %v257_v45 }
 0x132   : > { %v220_v39 = vrot.slane %v185_v38, %v193_v16  ;;  %v216_v40 = vrot.slane %v185_v38, %v189_v15  ;;  %v224_v41 = vrot.slane %v185_v38, %v197_v20  ;;  %v264_v10 = vsel %vm744_vm10, %v260_v0, 0.0 }
 0x134   : > { %227 = vrot.lane.b32.xlu0 %v220_v39, %s605_s30  ;;  %225 = vrot.lane.b32.xlu1 %v216_v40, %s605_s30  ;;  %v259_v43 = vpop.permute.xlu0 %258  ;;  %v281_v47 = vpop.permute.xlu1 %280 }
 0x135   : > { %v261_v1 = vsel %vm205_vm7, %v257_v45, %v259_v43 }
 0x136   : > { %v265_v11 = vsel %vm748_vm11, %v261_v1, 0.0 }
 0x138   : > { %297 = vrot.lane.b32.xlu0 %v253_v25, %s605_s30  ;;  %229 = vrot.lane.b32.xlu1 %v224_v41, %s605_s30  ;;  %v294_v44 = vpop.permute.xlu0 %293  ;;  %v285_v50 = vpop.permute.xlu1 %284 }
 0x13c   : > { %295 = vrot.lane.b32.xlu1 %v249_v22, %s605_s30  ;;  %v283_v46 = vpop.permute.xlu0 %282  ;;  %v202_v53 = vpop.permute.xlu1 %201 }
 0x13d   : > { %v287_v12 = vsel %vm286_vm8, %v281_v47, %v283_v46  ;;  %v288_v14 = vsel %vm286_vm8, %v283_v46, %v285_v50 }
 0x13e   : > { %v291_v21 = vadd.f32 %v287_v12, %v264_v10  ;;  %v292_v24 = vadd.f32 %v288_v14, %v265_v11 }
 0x140   : > { %v200_v49 = vpop.permute.xlu0 %199 }
 0x141   : > { %v206_v3 = vsel %vm205_vm7, %v200_v49, %v202_v53 }
 0x142   : > { %v210_v15 = vsel %vm744_vm10, %v206_v3, 0.0 }
 0x144   : > { %v204_v52 = vpop.permute.xlu0 %203 }
 0x145   : > { %v207_v4 = vsel %vm205_vm7, %v202_v53, %v204_v52 }
 0x146   : > { %v211_v16 = vsel %vm748_vm11, %v207_v4, 0.0 }
 0x1a6   : > { %v228_v58 = vpop.permute.xlu0 %227  ;;  %v226_v59 = vpop.permute.xlu1 %225 }
 0x1a7   : > { %v232_v61 = vsel %vm231_vm6, %v226_v59, %v228_v58 }
 0x1a8   : > { %v236_v7 = vsel %vm739_vm9, %v232_v61, 0.0 }
 0x1a9   : > { %v238_v18 = vsub.f32 %v210_v15, %v236_v7 }
 0x1aa   : > { %v230_v8 = vpop.permute.xlu1 %229  ;;  %v298_v22 = vpop.permute.xlu0 %297 }
 0x1ab   : > { %v233_v13 = vsel %vm231_vm6, %v228_v58, %v230_v8 }
 0x1ac   : > { %v237_v17 = vsel %vm752_vm12, %v233_v13, 0.0 }
 0x1ad   : > { %v239_v20 = vsub.f32 %v211_v16, %v237_v17 }
 0x1ae   : > { %v296_v23 = vpop.permute.xlu1 %295 }
 0x1af   : > { %v309_v25 = vcombine.low %v238_v18, %v239_v20  ;;  %v299_v26 = vsel %vm231_vm6, %v294_v44, %v296_v23  ;;  %v300_v27 = vsel %vm231_vm6, %v296_v23, %v298_v22 }
 0x1b0   : > { %v303_v28 = vsel %vm739_vm9, %v299_v26, 0.0  ;;  %v304_v29 = vsel %vm752_vm12, %v300_v27, 0.0 }
 0x1b1   : > { %v316_v9 = vrot.slane %v309_v25, %v315_v19  ;;  %v305_v30 = vadd.f32 %v303_v28, %v291_v21  ;;  %v306_v31 = vadd.f32 %v304_v29, %v292_v24 }
 0x1b3   : > { %v323_v32 = vrot.slane %v316_v9, %v315_v19  ;;  %v328_v33 = vcombine.low %v305_v30, %v306_v31 }
 0x1b5   : > { %v335_v34 = vrot.slane %v328_v33, %v315_v19  ;;  %325 = vst.msk [vmem:[%s132_s4] ss:$2 sm:$0x3] %vm726_vm1, %v323_v32 }
 0x1b7   : > { %v342_v35 = vrot.slane %v335_v34, %v315_v19 }
 0x1b9   : > { %440 = vst.msk [vmem:[%s132_s4 + $0x1] ss:$2 sm:$0x3] %vm726_vm1, %v342_v35 }
 0x1ba   : > { %544 = shalt.err (!%p541_p10)
}
 0x1bb   : > { %s545_s24 = scalar_lea.hbm %s359_s14, 64  ;;  %s549_s17 = scalar_lea.hbm %s819_s1, 128 }
 0x1bc   : > { %p546_p2 = scmp.ne.s32.totalorder %s359_s14, %s545_s24  ;;  %p550_p7 = scmp.lt.s32.totalorder %s359_s14, %s819_s1 }
 0x1bd   : > { %p551_p0 = scmp.lt.s32.totalorder %s549_s17, %s545_s24 }
 0x1be   : > { %p547_p4 = pnand %p546_p2, %p840_p12 }
 0x1bf   : > { %p552_p6 = por %p551_p0, %p550_p7 }
 0x1c0   : > { %p548_p9 = pneg %p547_p4 }
 0x1c2   : > { %p553_p11 = pnand %p552_p6, %p548_p9 }
 0x1c4   : > { %556 = shalt.err (!%p553_p11)
}
 0x1c5   : > { %450 = dma.vmem_to_hbm [thread:$0]  (%p840_p12), %s362_s5, 64, %s359_s14, %s347_s16  }
 0x1c6 PF: > { %s373_s28 = sand.u32 1, %s583_s6   ;;  %p841_p13 = scmp.ne.s32.totalorder %s825_s19, 0 }
 0x1c7   : > { %p842_p1 = scmp.ge.s32.totalorder %s595_s9, 2  ;;  %s374_s29 = scalar_lea.sflag [#allocation5], %s373_s28 }
 0x1c9   : > { %p457_p3 = pnand %p842_p1, %p841_p13 }
 0x1cb   : > { %p458_p5 = pneg %p457_p3 }
 0x1cd   : > { %578 = dma.done.wait (%p458_p5), %s374_s29, 64  }
 0x1ce   : > { %580 = vsyncadd (%p458_p5), %s374_s29, 4294967232  ;;  %p14_p8 = scmp.ge.s32.totalorder %s643_s12, 4   ;;  %s843_s6 = smov %s587_s7 }
 0x1cf   : > { %s844_s7 = smov %s591_s8  ;;  %s845_s8 = smov %s655_s15 }
 0x1d0   : > { %s846_s9 = smov %s643_s12  ;;  %16 = sbr.rel (!%p14_p8) target bundleno = 5 (0x5), region = 70 }
 0x1d5   :  { %379 = vsyncpa [#allocation4], 1 }
 0x1d6   :  { %381 = vsyncpa [#allocation4 + $0x1], 1 }
 0x1d7   :  { %382 = vsyncpa [#allocation5], 1 }
 0x1d8   :  { %384 = vsyncpa [#allocation5 + $0x1], 1 }

</bundles_post_ra>
